<compile_context>
chip_gen: v6e
topology: v6e:2x2x1
jax: 0.10.0
libtpu: 0.0.40
codegen_flags: <defaults>
</compile_context>

<pallas_src>
import functools

import jax
import jax.numpy as jnp
import numpy as np
from jax.experimental import pallas as pl
from jax.experimental.pallas import tpu as pltpu


def _round_up(n, m):
    return ((n + m - 1) // m) * m


def _taylor_kan_kernel(x_ref, w_ref, const_ref, o_ref, *, order):
    # x_ref:     (tb, D)
    # w_ref:     (max(order-1, 1), D, O)   -- w_ref[i-1] is the coeff slab for x**i
    # const_ref: (1, O)                    -- folded x**0 term (+ bias)
    # o_ref:     (tb, O)
    const = const_ref[...].astype(jnp.float32)                      # (1, O)

    if order <= 1:
        acc = jnp.broadcast_to(const, (o_ref.shape[0], o_ref.shape[1]))
    else:
        x = x_ref[...].astype(jnp.float32)                           # (tb, D)
        # i = 1 term.
        acc = jnp.dot(x, w_ref[0].astype(jnp.float32),
                      preferred_element_type=jnp.float32)
        x_pow = x
        for i in range(2, order):        # order is a tiny static constant -> unrolled
            x_pow = x_pow * x            # x**i (VPU, per-tile)
            acc = acc + jnp.dot(x_pow, w_ref[i - 1].astype(jnp.float32),
                                preferred_element_type=jnp.float32)
        acc = acc + const                # folded x**0 term + bias, one broadcast add

    o_ref[...] = acc.astype(o_ref.dtype)


def _choose_tile(n_rows, input_dim, out_dim, itemsize, tile_b):
    """Pick the batch tile from a lane-padded (physical) VMEM budget."""
    lane_d = _round_up(max(input_dim, 1), 128)
    lane_o = _round_up(max(out_dim, 1), 128)
    # Double-buffered streamed x + y tiles, plus f32 body temps (x_pow, acc, ...).
    phys_row_bytes = 2 * (lane_d + lane_o) * itemsize + 3 * max(lane_d, lane_o) * 4
    budget = 28 << 20
    tb_vmem_cap = max(8, (budget // phys_row_bytes) // 8 * 8)

    tb = min(int(tile_b), tb_vmem_cap, _round_up(n_rows, 8))
    tb = max(8, _round_up(tb, 8))

    # Re-balance so the grid has >= 2 roughly even steps when there is enough
    # work (v7x megacore), and the last block is not tiny.
    if n_rows > tb:
        steps = pl.cdiv(n_rows, tb)
        tb = _round_up(pl.cdiv(n_rows, steps), 8)
    return tb


def taylor_kan_forward(x, coeffs_t, bias, *, addbias=True, tile_b=8192):
    """x: (..., input_dim); coeffs_t: (order, input_dim, out_dim); bias: (1, out_dim)."""
    order, input_dim, out_dim = coeffs_t.shape
    orig_shape = x.shape
    assert orig_shape[-1] == input_dim

    x_flat = x.reshape(-1, input_dim)
    n_rows = x_flat.shape[0]
    itemsize = jnp.dtype(x.dtype).itemsize

    tb = _choose_tile(n_rows, input_dim, out_dim, itemsize, tile_b)
    grid = (pl.cdiv(n_rows, tb),)

    # Fold the x**0 block (+ bias) into a single (1, out_dim) constant.
    const = jnp.sum(coeffs_t[0], axis=0, keepdims=True).astype(jnp.float32)
    if addbias:
        assert bias is not None
        const = const + jnp.asarray(bias, jnp.float32).reshape(1, out_dim)

    # Per-power weight slabs for i = 1..order-1 (dummy zeros if order == 1).
    if order > 1:
        w = coeffs_t[1:]                                   # (order-1, D, O)
    else:
        w = jnp.zeros((1, input_dim, out_dim), coeffs_t.dtype)
    w_rows = w.shape[0]

    kernel = functools.partial(_taylor_kan_kernel, order=order)

    # VMEM budget on *physical* (lane-padded) tile sizes, incl. body temps.
    lane_d = _round_up(input_dim, 128)
    lane_o = _round_up(out_dim, 128)
    io_bytes = 2 * tb * (lane_d + lane_o) * itemsize          # double-buffered x + y
    temp_bytes = 3 * tb * max(lane_d, lane_o) * 4             # f32 x_pow / acc temps
    w_bytes = 2 * (w_rows * _round_up(input_dim, 8) * lane_o * 4 + 8 * lane_o * 4)
    vmem_limit = int(min(max(io_bytes + temp_bytes + w_bytes + (4 << 20), 16 << 20),
                         48 << 20))

    cost = pl.CostEstimate(
        flops=2 * n_rows * max(order - 1, 1) * input_dim * out_dim,
        transcendentals=0,
        bytes_accessed=(n_rows * (input_dim + out_dim) * itemsize
                        + order * input_dim * out_dim * 4
                        + out_dim * 4),
    )

    y_flat = pl.pallas_call(
        kernel,
        out_shape=jax.ShapeDtypeStruct((n_rows, out_dim), x.dtype),
        grid_spec=pltpu.PrefetchScalarGridSpec(
            num_scalar_prefetch=0,
            grid=grid,
            in_specs=[
                pl.BlockSpec((tb, input_dim), lambda b: (b, 0)),
                # Constant index_maps -> weight/const slabs resident, DMA'd once.
                pl.BlockSpec((w_rows, input_dim, out_dim), lambda b: (0, 0, 0)),
                pl.BlockSpec((1, out_dim), lambda b: (0, 0)),
            ],
            out_specs=pl.BlockSpec((tb, out_dim), lambda b: (b, 0)),
        ),
        compiler_params=pltpu.CompilerParams(
            # Pure batch-parallel grid: lets v7x megacore shard it (no-op v5e/v6e).
            dimension_semantics=("parallel",),
            vmem_limit_bytes=vmem_limit,
        ),
        cost_estimate=cost,
    )(x_flat, w, const)

    return y_flat.reshape(orig_shape[:-1] + (out_dim,))


def taylor_kan_reference(x, coeffs_t, bias, addbias=True):
    """Plain-JAX reference mirroring the PyTorch loop semantics."""
    order, input_dim, out_dim = coeffs_t.shape
    x_flat = x.reshape(-1, input_dim)
    y = jnp.zeros((x_flat.shape[0], out_dim), jnp.float32)
    x_pow = jnp.ones_like(x_flat)
    for i in range(order):
        y = y + x_pow @ coeffs_t[i]
        x_pow = x_pow * x_flat
    if addbias:
        y = y + bias
    return y.reshape(x.shape[:-1] + (out_dim,)).astype(x.dtype)


if __name__ == "__main__":
    # Module hyper-parameters (small, consistent with the forward's contract).
    input_dim, out_dim, order, addbias = 16, 32, 3, True

    key = jax.random.PRNGKey(0)
    k_x, k_c = jax.random.split(key)

    # Deterministic parameter init, mirroring torch: randn(out, in, order) * 0.01, bias zeros.
    coeffs_torch_layout = jax.random.normal(
        k_c, (out_dim, input_dim, order), dtype=jnp.float32) * 0.01
    # Kernel-friendly layout: (order, input_dim, out_dim).
    coeffs_t = jnp.transpose(coeffs_torch_layout, (2, 1, 0))
    bias = jnp.zeros((1, out_dim), dtype=jnp.float32)

    # Example input: (batch=2, seq=8, input_dim=16); leading dims are arbitrary.
    x = jax.random.normal(k_x, (2, 8, input_dim), dtype=jnp.float32)

    y = taylor_kan_forward(x, coeffs_t, bias, addbias=addbias)
    y = jax.block_until_ready(y)

    y_ref = taylor_kan_reference(x, coeffs_t, bias, addbias=addbias)
    np.testing.assert_allclose(np.asarray(y), np.asarray(y_ref), rtol=1e-5, atol=1e-5)
    assert y.shape == (2, 8, out_dim)

    # Also exercise a ragged, multi-step grid (tile does not divide rows).
    x_big = jax.random.normal(jax.random.PRNGKey(1), (3, 7, 11, input_dim),
                              dtype=jnp.float32)
    y_big = jax.block_until_ready(
        taylor_kan_forward(x_big, coeffs_t, bias, addbias=addbias, tile_b=64))
    y_big_ref = taylor_kan_reference(x_big, coeffs_t, bias, addbias=addbias)
    np.testing.assert_allclose(np.asarray(y_big), np.asarray(y_big_ref),
                               rtol=1e-5, atol=1e-5)

    # addbias=False path (bias fully folded out).
    y_nb = jax.block_until_ready(
        taylor_kan_forward(x, coeffs_t, None, addbias=False))
    y_nb_ref = taylor_kan_reference(x, coeffs_t, bias * 0, addbias=False)
    np.testing.assert_allclose(np.asarray(y_nb), np.asarray(y_nb_ref),
                               rtol=1e-5, atol=1e-5)

    print("KERNEL_OK")
</pallas_src>

<mosaic_0001>
module attributes {stable_mosaic.version = 11 : i64} {
  func.func @_taylor_kan_kernel(%arg0: i32, %arg1: memref<16x16xf32, #tpu.memory_space<vmem>>, %arg2: memref<2x16x32xf32, #tpu.memory_space<vmem>>, %arg3: memref<1x32xf32, #tpu.memory_space<vmem>>, %arg4: memref<16x32xf32, #tpu.memory_space<vmem>>) attributes {dimension_semantics = [#tpu.dimension_semantics<parallel>], iteration_bounds = array<i64: 1>, scalar_prefetch = 0 : i64, scratch_operands = 0 : i64, tpu.core_type = #tpu.core_type<tc>, window_params = [{transform_indices = @transform_0, window_bounds = array<i64: 16, 16>}, {pipeline_mode = #tpu.pipeline_mode<synchronous>, transform_indices = @transform_1, window_bounds = array<i64: 2, 16, 32>}, {pipeline_mode = #tpu.pipeline_mode<synchronous>, transform_indices = @transform_2, window_bounds = array<i64: 1, 32>}, {transform_indices = @transform_3, window_bounds = array<i64: 16, 32>}]} {
    %c0 = arith.constant 0 : index
    %c0_0 = arith.constant 0 : index
    %0 = vector.load %arg3[%c0, %c0_0] : memref<1x32xf32, #tpu.memory_space<vmem>>, vector<1x32xf32>
    %c0_1 = arith.constant 0 : index
    %c0_2 = arith.constant 0 : index
    %1 = vector.load %arg1[%c0_1, %c0_2] : memref<16x16xf32, #tpu.memory_space<vmem>>, vector<16x16xf32>
    %c0_3 = arith.constant 0 : index
    %c0_4 = arith.constant 0 : index
    %c0_5 = arith.constant 0 : index
    %2 = vector.load %arg2[%c0_3, %c0_4, %c0_5] : memref<2x16x32xf32, #tpu.memory_space<vmem>>, vector<1x16x32xf32>
    %3 = vector.shape_cast %2 : vector<1x16x32xf32> to vector<16x32xf32>
    %cst = arith.constant dense<0.000000e+00> : vector<16x32xf32>
    %4 = tpu.matmul %1, %3, %cst {dimension_numbers = #tpu.dot_dimension_numbers<[1], [0], [0], [1], [0, 0, 1, 1], [], []>} : vector<16x16xf32>, vector<16x32xf32>, vector<16x32xf32> -> vector<16x32xf32>
    %5 = arith.mulf %1, %1 : vector<16x16xf32>
    %c1 = arith.constant 1 : index
    %c0_6 = arith.constant 0 : index
    %c0_7 = arith.constant 0 : index
    %6 = vector.load %arg2[%c1, %c0_6, %c0_7] : memref<2x16x32xf32, #tpu.memory_space<vmem>>, vector<1x16x32xf32>
    %7 = vector.shape_cast %6 : vector<1x16x32xf32> to vector<16x32xf32>
    %cst_8 = arith.constant dense<0.000000e+00> : vector<16x32xf32>
    %8 = tpu.matmul %5, %7, %cst_8 {dimension_numbers = #tpu.dot_dimension_numbers<[1], [0], [0], [1], [0, 0, 1, 1], [], []>} : vector<16x16xf32>, vector<16x32xf32>, vector<16x32xf32> -> vector<16x32xf32>
    %9 = arith.addf %4, %8 : vector<16x32xf32>
    %10 = vector.broadcast %0 : vector<1x32xf32> to vector<16x32xf32>
    %11 = arith.addf %9, %10 : vector<16x32xf32>
    %c0_9 = arith.constant 0 : index
    %c0_10 = arith.constant 0 : index
    %12 = vector.load %arg4[%c0_9, %c0_10] : memref<16x32xf32, #tpu.memory_space<vmem>>, vector<16x32xf32>
    tpu.vector_store %arg4[%c0_9, %c0_10], %11 {strides = array<i32>} : memref<16x32xf32, #tpu.memory_space<vmem>>, vector<16x32xf32>,
    return
  }
  func.func @transform_0(%arg0: i32) -> (i32, i32) {
    %c0_i32 = arith.constant 0 : i32
    %c0_i32_0 = arith.constant 0 : i32
    return %arg0, %c0_i32 : i32, i32
  }
  func.func @transform_1(%arg0: i32) -> (i32, i32, i32) {
    %c0_i32 = arith.constant 0 : i32
    %c0_i32_0 = arith.constant 0 : i32
    %c0_i32_1 = arith.constant 0 : i32
    %c0_i32_2 = arith.constant 0 : i32
    return %c0_i32, %c0_i32_0, %c0_i32_1 : i32, i32, i32
  }
  func.func @transform_2(%arg0: i32) -> (i32, i32) {
    %c0_i32 = arith.constant 0 : i32
    %c0_i32_0 = arith.constant 0 : i32
    %c0_i32_1 = arith.constant 0 : i32
    return %c0_i32, %c0_i32_0 : i32, i32
  }
  func.func @transform_3(%arg0: i32) -> (i32, i32) {
    %c0_i32 = arith.constant 0 : i32
    %c0_i32_0 = arith.constant 0 : i32
    return %arg0, %c0_i32 : i32, i32
  }
}

</mosaic_0001>

<bundles_post_ra>
// kernel: tpu_custom_call.1
= control target key start
LH: loop header
LB: loop body
LE: loop exit
PB: predicated region body
PF: predicated region fallthrough
CT: control target
= control target key end

     0   :  { %8 = vsyncpa [#allocation3], 0  ;;  %s389_s0 = inlined_call_operand.hbm [shape: f32[16,16], index: 0, kind: input, shape index: {}]   ;;  %s390_s1 = inlined_call_operand.hbm [shape: f32[2,16,32], index: 1, kind: input, shape index: {}]   ;;  %s391_s2 = inlined_call_operand.vmem [shape: f32[1,32], index: 2, kind: input, shape index: {}]   ;;  %s392_s3 = inlined_call_operand.hbm [shape: f32[16,32], index: 3, kind: output, shape index: {}]  }
   0x1   :  { %9 = vsyncpa [#allocation6], 0 }
   0x2   :  { %10 = vsyncpa [#allocation4], 0  ;;  %s343_s12 = smov [#allocation2]  }
   0x3   :  { %s16_s13 = sshll.u32 %s343_s12, 4  ;;  %s17_s13 = int_to_ptr.vmem [resolvable:$true] %s16_s13 }
   0x4   :  { %s285_s14 = scalar_lea.vmem %s17_s13, 256  ;;  %p290_p1 = scmp.lt.s32.totalorder %s17_s13, %s17_s13 }
   0x5   :  { %p286_p0 = scmp.ne.s32.totalorder %s17_s13, %s285_s14  ;;  %p291_p2 = scmp.lt.s32.totalorder %s285_s14, %s285_s14 }
   0x7   :  { %p292_p3 = por %p291_p2, %p290_p1 }
   0x9   :  { %p293_p4 = pnand %p292_p3, %p286_p0 }
   0xb   :  { %296 = shalt.err (!%p293_p4)
}
   0xc   :  { %s344_s15 = smov 128   ;;  %s345_s16 = smov 8  }
   0xd   :  { %22 = dma.hbm_to_vmem [thread:$0]  %s389_s0, 256, %s17_s13, [#allocation3], %s344_s15, %s344_s15, %s345_s16  }
   0xe   :  { %s346_s19 = smov [#allocation5]  }
   0xf   :  { %s28_s20 = sshll.u32 %s346_s19, 4  ;;  %s29_s20 = int_to_ptr.vmem [resolvable:$true] %s28_s20 }
  0x10   :  { %s305_s21 = scalar_lea.vmem %s29_s20, 512  ;;  %p310_p6 = scmp.lt.s32.totalorder %s29_s20, %s29_s20 }
  0x11   :  { %p306_p5 = scmp.ne.s32.totalorder %s29_s20, %s305_s21  ;;  %p311_p7 = scmp.lt.s32.totalorder %s305_s21, %s305_s21 }
  0x13   :  { %p312_p8 = por %p311_p7, %p310_p6 }
  0x15   :  { %p313_p9 = pnand %p312_p8, %p306_p5 }
  0x17   :  { %316 = shalt.err (!%p313_p9)
}
  0x18   :  { %34 = dma.hbm_to_vmem [thread:$0]  %s390_s1, 512, %s29_s20, [#allocation6], %s344_s15, %s344_s15, %s345_s16  }
  0x19   :  { %337 = dma.done.wait [#allocation3], 256  }
  0x1a   :  { %338 = vsyncadd [#allocation3], 4294967040 }
  0x1b   :  { %339 = dma.done.wait [#allocation6], 512  }
  0x1c   :  { %340 = vsyncadd [#allocation6], 4294966784  ;;  %v52_v0 = vld [vmem:[#allocation5 + $0x18] sm:$0xff]  ;;  %v47_v1 = vld [vmem:[#allocation5 + $0x8] sm:$0xff]  ;;  %vm53_vm0 = vcmask 130048   ;;  %vm224_vm1 = vcmask 261120  }
  0x1d   :  { %v51_v2 = vld [vmem:[#allocation5 + $0x10] sm:$0xff]  ;;  %258 = vmatprep.subr.mxu0 %v52_v0  ;;  %265 = vmatprep.subr.mxu1 %v47_v1  ;;  %v46_v3 = vld [vmem:[#allocation5] sm:$0xff]  ;;  %v45_v5 = vld [vmem:[#allocation2 + $0x8] sm:$0xff]  ;;  %s347_s24 = smov [#allocation7]  }
  0x1e   :  { %v44_v4 = vld [vmem:[#allocation2] sm:$0xff]  ;;  %259 = vmatpush3.msra.mxu0 %v52_v0  ;;  %266 = vmatpush3.msra.mxu1 %v47_v1  ;;  %v49_v7 = vmul.f32 %v45_v5, %v45_v5  ;;  %s232_s25 = sshll.u32 %s347_s24, 4  ;;  %s233_s25 = int_to_ptr.vmem [resolvable:$true] %s232_s25 }
  0x1f   :  { %v48_v6 = vmul.f32 %v44_v4, %v44_v4  ;;  %260 = vmatprep.subr.mxu0 %v51_v2  ;;  %267 = vmatprep.subr.mxu1 %v46_v3  ;;  %v249_v9 = vld [vmem:[%s391_s2] ss:$0 sm:$0xff]  ;;  %s317_s26 = scalar_lea.vmem %s233_s25, 256  ;;  %p322_p11 = scmp.lt.s32.totalorder %s233_s25, %s233_s25 }
  0x20   :  { %261 = vmatpush3.msra.mxu0 %v51_v2  ;;  %268 = vmatpush3.msra.mxu1 %v46_v3  ;;  %p318_p10 = scmp.ne.s32.totalorder %s233_s25, %s317_s26  ;;  %p323_p12 = scmp.lt.s32.totalorder %s317_s26, %s317_s26 }
  0x21   :  { %262 = vmatprep.mubr.msk.f32.mxu0 %vm53_vm0, %v48_v6  ;;  %269 = vmatprep.mubr.msk.f32.mxu1 %vm53_vm0, %v44_v4 }
  0x22   :  { %263 = vmatmul.mubr.msk.f32.vlgmr.msra.gmra.mxu0 %vm53_vm0, %v49_v7  ;;  %270 = vmatmul.mubr.msk.f32.vlgmr.msra.gmra.mxu1 %vm53_vm0, %v45_v5  ;;  %p324_p13 = por %p323_p12, %p322_p11 }
  0x24   :  { %p325_p0 = pnand %p324_p13, %p318_p10 }
  0xe2   :  { %v264_v8 = vpop.f32.mrf.mxu0  ;;  %v271_v10 = vpop.f32.mrf.mxu1 }
  0xe3   :  { %v213_v11 = vadd.f32 %v271_v10, %v264_v8 }
  0xe4   :  { %v126_v12 = vpop.f32.mrf.mxu0  ;;  %v207_v13 = vpop.f32.mrf.mxu1 }
  0xe5   :  { %v223_v14 = vadd.f32 %v249_v9, %v213_v11  ;;  %v208_v15 = vadd.f32 %v207_v13, %v126_v12 }
  0xe7   :  { %v222_v16 = vadd.f32 %v249_v9, %v208_v15  ;;  %226 = vst.msk [vmem:[#allocation7 + $0x8] sm:$0xff] %vm224_vm1, %v223_v14 }
  0xe9   :  { %225 = vst.msk [vmem:[#allocation7] sm:$0xff] %vm224_vm1, %v222_v16 }
  0xea   :  { %328 = shalt.err (!%p325_p0)
}
  0xeb   :  { %238 = dma.vmem_to_hbm [thread:$0]  %s233_s25, 256, %s392_s3, [#allocation4], %s344_s15, %s344_s15, %s345_s16  }
  0xec   :  { %341 = dma.done.wait [#allocation4], 256  }
  0xed   :  { %342 = vsyncadd [#allocation4], 4294967040 }
  0xee   :  { %242 = vsyncpa [#allocation3], 1 }
  0xef   :  { %243 = vsyncpa [#allocation6], 1 }
  0xf0   :  { %244 = vsyncpa [#allocation4], 1 }

</bundles_post_ra>
